<compile_context>
chip_gen: v6e
topology: v6e:2x2x1
jax: 0.10.0
libtpu: 0.0.40
codegen_flags: <defaults>
</compile_context>

<pallas_src>
import math

import jax
import jax.numpy as jnp
from jax.experimental import pallas as pl
from jax.experimental.pallas import tpu as pltpu


# ----------------------------- Pallas kernels ------------------------------

def _mbw_discretize_kernel(x_ref, o_ref):
    # project: clamp to [0, 1]; discretize: round(x*255)/255
    x = jnp.clip(x_ref[...], 0.0, 1.0)
    o_ref[...] = jnp.round(x * 255.0) / 255.0


def _mbw_project_kernel(x_ref, o_ref):
    # project only: clamp to [0, 1]
    o_ref[...] = jnp.clip(x_ref[...], 0.0, 1.0)


# ----------------------------- Tiling helpers ------------------------------

_SMALL_BYTES = 1 << 20          # below this, use a single whole-array block
_TILE_BUDGET = 2 << 20          # ~2 MiB per block; x4 buffers (in/out, 2-deep)
_VMEM_LIMIT = 32 << 20          # explicit scoped-VMEM limit, safe on v5e/v6e/v7x


def _choose_blocks(R, F, itemsize):
    """Pick (row_block, feat_block) so one tile stays within _TILE_BUDGET.

    feat_block is the full feature dim when an (8, F) tile fits the budget,
    otherwise a large multiple of 128 (lane-dense stores).  row_block is a
    multiple of 8 (or the full R) filling the remaining budget.
    """
    per_row = F * itemsize
    if 8 * per_row <= _TILE_BUDGET:
        feat_block = F                       # full dim: always a legal block dim
    else:
        feat_block = max(128, (_TILE_BUDGET // (8 * itemsize) // 128) * 128)

    row_budget = max(1, _TILE_BUDGET // (feat_block * itemsize))
    if R <= row_budget:
        row_block = R                        # full dim: always a legal block dim
    else:
        row_block = max(8, (row_budget // 8) * 8)
    return row_block, feat_block


def _run_single_block(kernel, x2d):
    """Whole-array single-block call for small slabs (< 1 MiB)."""
    return pl.pallas_call(
        kernel,
        out_shape=jax.ShapeDtypeStruct(x2d.shape, x2d.dtype),
        compiler_params=pltpu.CompilerParams(vmem_limit_bytes=_VMEM_LIMIT),
    )(x2d)


def _run_tiled(kernel, x2d):
    """2-D tiled elementwise call over an (R, F) slab (no padding needed)."""
    R, F = x2d.shape
    itemsize = jnp.dtype(x2d.dtype).itemsize
    row_block, feat_block = _choose_blocks(R, F, itemsize)
    grid = (pl.cdiv(R, row_block), pl.cdiv(F, feat_block))
    spec = pl.BlockSpec((row_block, feat_block), lambda i, j: (i, j))
    return pl.pallas_call(
        kernel,
        out_shape=jax.ShapeDtypeStruct((R, F), x2d.dtype),
        grid=grid,
        in_specs=[spec],
        out_specs=spec,
        compiler_params=pltpu.CompilerParams(
            dimension_semantics=("parallel", "parallel"),
            vmem_limit_bytes=_VMEM_LIMIT),
    )(x2d)


def mbw_transform(x, discretize=True):
    """Apply project (+ optional discretize) to an NCHW (or any) float stack."""
    kernel = _mbw_discretize_kernel if discretize else _mbw_project_kernel

    orig_shape = x.shape
    n = orig_shape[0]
    feat = math.prod(orig_shape[1:]) if len(orig_shape) > 1 else 1
    x2d = x.reshape(n, feat)            # free metadata reshape, lane-dense slab

    itemsize = jnp.dtype(x2d.dtype).itemsize
    total_bytes = n * feat * itemsize
    if total_bytes < _SMALL_BYTES:
        out2d = _run_single_block(kernel, x2d)
    else:
        out2d = _run_tiled(kernel, x2d)
    return out2d.reshape(orig_shape)


# ----------------------------- Module wrapper ------------------------------

class ImageMBW:
    """JAX/Pallas port of the PyTorch ImageMBW module."""

    def __init__(self, watermark_size, response_size, watermark_scale,
                 response_scale, reset=False, *, key=None):
        if key is None:
            key = jax.random.PRNGKey(0)
        k_wm, k_resp, k_orig = jax.random.split(key, 3)
        # watermark_samples = randint(0, watermark_scale, watermark_size).float() / 255
        self.watermark_samples = (
            jax.random.randint(k_wm, watermark_size, 0, watermark_scale)
            .astype(jnp.float32) / 255.0
        )
        self.response_size = response_size
        self.response_scale = response_scale
        self.response = jax.random.randint(
            k_resp, response_size, 0, response_scale, dtype=jnp.int32)
        if reset:
            self.original_response = jax.random.randint(
                k_orig, response_size, 0, response_scale, dtype=jnp.int32)
        self.training = False

    def train(self):
        self.training = True

    def eval(self):
        self.training = False

    def forward(self, discretize=True, num_sample=1, rng_key=None):
        if self.training:
            # TODO(synk): torch.randint sampling of rand_idx is host-side
            # randomness; the gather is plain-JAX glue around the Pallas kernel.
            if rng_key is None:
                rng_key = jax.random.PRNGKey(1)
            rand_idx = jax.random.randint(
                rng_key, (num_sample,), 0, self.watermark_samples.shape[0])
            samples = self.watermark_samples[rand_idx]
            resp = self.response[rand_idx]
        else:
            samples = self.watermark_samples
            resp = self.response

        out = mbw_transform(samples, discretize=discretize)
        return out, resp

    __call__ = forward


# --------------------------------- main ------------------------------------

if __name__ == "__main__":
    # Small shapes consistent with the module:
    #   8 watermark images, NCHW = (8, 4, 16, 16), 8 integer responses.
    watermark_size = (8, 4, 16, 16)
    response_size = (8,)
    watermark_scale = 256
    response_scale = 2

    mbw = ImageMBW(watermark_size, response_size, watermark_scale,
                   response_scale, reset=False, key=jax.random.PRNGKey(0))
    mbw.eval()

    # --- eval / discretize path (small-input single-block kernel) ----------
    wm_out, resp_out = mbw.forward(discretize=True)
    jax.block_until_ready(wm_out)
    jax.block_until_ready(resp_out)

    ref = jnp.round(jnp.clip(mbw.watermark_samples, 0.0, 1.0) * 255.0) / 255.0
    assert wm_out.shape == watermark_size
    assert resp_out.shape == response_size
    assert jnp.allclose(wm_out, ref, atol=0.0)

    # --- project-only path --------------------------------------------------
    wm_proj, _ = mbw.forward(discretize=False)
    jax.block_until_ready(wm_proj)
    assert jnp.allclose(wm_proj, jnp.clip(mbw.watermark_samples, 0.0, 1.0),
                        atol=0.0)

    # --- exercise the 2-D tiled path (feat dim forced to tile, partial edge
    # blocks on both axes, values outside [0,1] to exercise the clamp) ------
    k = jax.random.PRNGKey(42)
    x_big = jax.random.uniform(k, (24, 3, 200, 200), dtype=jnp.float32,
                               minval=-0.25, maxval=1.25)
    out_big = mbw_transform(x_big, discretize=True)
    jax.block_until_ready(out_big)
    ref_big = jnp.round(jnp.clip(x_big, 0.0, 1.0) * 255.0) / 255.0
    assert out_big.shape == x_big.shape
    assert jnp.allclose(out_big, ref_big, atol=0.0)

    print("KERNEL_OK")
</pallas_src>

<mosaic_0001>
module attributes {stable_mosaic.version = 11 : i64} {
  func.func @_mbw_discretize_kernel(%arg0: memref<8x1024xf32, #tpu.memory_space<vmem>>, %arg1: memref<8x1024xf32, #tpu.memory_space<vmem>>) attributes {dimension_semantics = [], scalar_prefetch = 0 : i64, scratch_operands = 0 : i64, tpu.core_type = #tpu.core_type<tc>} {
    %c0 = arith.constant 0 : index
    %c0_0 = arith.constant 0 : index
    %0 = vector.load %arg0[%c0, %c0_0] : memref<8x1024xf32, #tpu.memory_space<vmem>>, vector<8x1024xf32>
    %cst = arith.constant 0.000000e+00 : f32
    %cst_1 = arith.constant 1.000000e+00 : f32
    %1 = vector.broadcast %cst : f32 to vector<8x1024xf32>
    %2 = arith.maximumf %1, %0 : vector<8x1024xf32>
    %3 = vector.broadcast %cst_1 : f32 to vector<8x1024xf32>
    %4 = arith.minimumf %3, %2 : vector<8x1024xf32>
    %cst_2 = arith.constant 2.550000e+02 : f32
    %5 = vector.broadcast %cst_2 : f32 to vector<8x1024xf32>
    %6 = arith.mulf %4, %5 : vector<8x1024xf32>
    %7 = math.roundeven %6 : vector<8x1024xf32>
    %cst_3 = arith.constant 2.550000e+02 : f32
    %8 = vector.broadcast %cst_3 : f32 to vector<8x1024xf32>
    %9 = arith.divf %7, %8 : vector<8x1024xf32>
    %c0_4 = arith.constant 0 : index
    %c0_5 = arith.constant 0 : index
    %10 = vector.load %arg1[%c0_4, %c0_5] : memref<8x1024xf32, #tpu.memory_space<vmem>>, vector<8x1024xf32>
    tpu.vector_store %arg1[%c0_4, %c0_5], %9 {strides = array<i32>} : memref<8x1024xf32, #tpu.memory_space<vmem>>, vector<8x1024xf32>,
    return
  }
}

</mosaic_0001>

<bundles_post_ra>
// kernel: tpu_custom_call.1
= control target key start
LH: loop header
LB: loop body
LE: loop exit
PB: predicated region body
PF: predicated region fallthrough
CT: control target
= control target key end

     0   :  { %6 = vsyncpa [#allocation3], 0  ;;  %s257_s0 = inlined_call_operand.hbm [shape: f32[8,1024], index: 0, kind: input, shape index: {}]   ;;  %s258_s1 = inlined_call_operand.hbm [shape: f32[8,1024], index: 1, kind: output, shape index: {}]  }
   0x1   :  { %7 = vsyncpa [#allocation4], 0  ;;  %s203_s6 = smov [#allocation2]  }
   0x2   :  { %s14_s7 = sshll.u32 %s203_s6, 4  ;;  %s15_s7 = int_to_ptr.vmem [resolvable:$true] %s14_s7 }
   0x3   :  { %s167_s8 = scalar_lea.vmem %s15_s7, 1024  ;;  %p172_p1 = scmp.lt.s32.totalorder %s15_s7, %s15_s7 }
   0x4   :  { %p168_p0 = scmp.ne.s32.totalorder %s15_s7, %s167_s8  ;;  %p173_p2 = scmp.lt.s32.totalorder %s167_s8, %s167_s8 }
   0x6   :  { %p174_p3 = por %p173_p2, %p172_p1 }
   0x8   :  { %p175_p4 = pnand %p174_p3, %p168_p0 }
   0xa   :  { %178 = shalt.err (!%p175_p4)
}
   0xb   :  { %17 = dma.hbm_to_vmem [thread:$0]  %s257_s0, 1024, %s15_s7, [#allocation3]  }
   0xc   :  { %199 = dma.done.wait [#allocation3], 1024  }
   0xd   :  { %200 = vsyncadd [#allocation3], 4294966272  ;;  %v21_v0 = vld [vmem:[#allocation2] sm:$0xff]  ;;  %v22_v1 = vld [vmem:[#allocation2 + $0x8] sm:$0xff]  ;;  %s204_s0 = smov [#allocation5]  }
   0xe   :  { %v23_v2 = vld [vmem:[#allocation2 + $0x10] sm:$0xff]  ;;  %v29_v3 = vmax.f32 %v21_v0, 0.0  ;;  %v30_v4 = vmax.f32 %v22_v1, 0.0  ;;  %v24_v6 = vld [vmem:[#allocation2 + $0x18] sm:$0xff]  ;;  %v25_v7 = vld [vmem:[#allocation2 + $0x20] sm:$0xff]  ;;  %s84_s11 = sshll.u32 %s204_s0, 4  ;;  %s85_s11 = int_to_ptr.vmem [resolvable:$true] %s84_s11 }
   0xf   :  { %v31_v5 = vmax.f32 %v23_v2, 0.0  ;;  %v26_v8 = vld [vmem:[#allocation2 + $0x28] sm:$0xff]  ;;  %v32_v9 = vmax.f32 %v24_v6, 0.0  ;;  %v33_v10 = vmax.f32 %v25_v7, 0.0  ;;  %v27_v12 = vld [vmem:[#allocation2 + $0x30] sm:$0xff]  ;;  %v28_v13 = vld [vmem:[#allocation2 + $0x38] sm:$0xff]  ;;  %p184_p6 = scmp.lt.s32.totalorder %s85_s11, %s85_s11 }
  0x10   :  { %v34_v11 = vmax.f32 %v26_v8, 0.0  ;;  %v37_v14 = vmin.f32 %v29_v3, 1.0  ;;  %v38_v15 = vmin.f32 %v30_v4, 1.0  ;;  %v35_v17 = vmax.f32 %v27_v12, 0.0  ;;  %s179_s12 = scalar_lea.vmem %s85_s11, 1024 }
  0x11   :  { %v39_v16 = vmin.f32 %v31_v5, 1.0  ;;  %v40_v18 = vmin.f32 %v32_v9, 1.0  ;;  %v41_v19 = vmin.f32 %v33_v10, 1.0  ;;  %v36_v21 = vmax.f32 %v28_v13, 0.0  ;;  %p180_p5 = scmp.ne.s32.totalorder %s85_s11, %s179_s12  ;;  %p185_p7 = scmp.lt.s32.totalorder %s179_s12, %s179_s12 }
  0x12   :  { %v42_v20 = vmin.f32 %v34_v11, 1.0  ;;  %v45_v22 = vmul.f32 255.0, %v37_v14  ;;  %v46_v23 = vmul.f32 255.0, %v38_v15  ;;  %v43_v28 = vmin.f32 %v35_v17, 1.0 }
  0x13   :  { %v47_v24 = vmul.f32 255.0, %v39_v16  ;;  %v48_v25 = vmul.f32 255.0, %v40_v18  ;;  %v49_v26 = vmul.f32 255.0, %v41_v19  ;;  %v44_v32 = vmin.f32 %v36_v21, 1.0  ;;  %p186_p8 = por %p185_p7, %p184_p6 }
  0x14   :  { %v218_v27 = vmul.f32 255.0, %v42_v20  ;;  %v93_v29 = vand.u32 2147483647, %v45_v22  ;;  %v95_v30 = vcvt.f32.s32 %v45_v22  ;;  %v101_v31 = vand.u32 2147483647, %v46_v23 }
  0x15   :  { %v98_v33 = vand.u32 2147483648, %v45_v22  ;;  %v103_v34 = vcvt.f32.s32 %v46_v23  ;;  %v109_v35 = vand.u32 2147483647, %v47_v24  ;;  %v111_v36 = vcvt.f32.s32 %v47_v24  ;;  %p187_p9 = pnand %p186_p8, %p180_p5 }
  0x16   :  { %vm220_vm0 = vcmp.lt.f32.partialorder %v93_v29, 8388608.0  ;;  %v96_v38 = vcvt.s32.f32 %v95_v30  ;;  %vm224_vm1 = vcmp.lt.f32.partialorder %v101_v31, 8388608.0  ;;  %v106_v40 = vand.u32 2147483648, %v46_v23 }
  0x17   :  { %v104_v41 = vcvt.s32.f32 %v103_v34  ;;  %v112_v42 = vcvt.s32.f32 %v111_v36  ;;  %v114_v43 = vand.u32 2147483648, %v47_v24  ;;  %v117_v44 = vand.u32 2147483647, %v48_v25 }
  0x18   :  { %v97_v45 = vand.u32 2147483647, %v96_v38  ;;  %vm228_vm2 = vcmp.lt.f32.partialorder %v109_v35, 8388608.0  ;;  %v119_v47 = vcvt.f32.s32 %v48_v25  ;;  %v125_v48 = vand.u32 2147483647, %v49_v26 }
  0x19   :  { %v105_v49 = vand.u32 2147483647, %v104_v41  ;;  %v113_v50 = vand.u32 2147483647, %v112_v42  ;;  %v122_v51 = vand.u32 2147483648, %v48_v25  ;;  %v127_v52 = vcvt.f32.s32 %v49_v26 }
  0x1a   :  { %v99_v53 = vor.u32 %v98_v33, %v97_v45  ;;  %vm232_vm3 = vcmp.lt.f32.partialorder %v117_v44, 8388608.0  ;;  %v120_v55 = vcvt.s32.f32 %v119_v47  ;;  %vm236_vm4 = vcmp.lt.f32.partialorder %v125_v48, 8388608.0 }
  0x1b   :  { %v107_v57 = vor.u32 %v106_v40, %v105_v49  ;;  %v115_v58 = vor.u32 %v114_v43, %v113_v50  ;;  %v128_v59 = vcvt.s32.f32 %v127_v52  ;;  %v130_v60 = vand.u32 2147483648, %v49_v26 }
  0x1c   :  { %v100_v61 = vsel %vm220_vm0, %v99_v53, %v45_v22  ;;  %v121_v62 = vand.u32 2147483647, %v120_v55  ;;  %v133_v63 = vand.u32 2147483647, %v218_v27  ;;  %v135_v0 = vcvt.f32.s32 %v218_v27 }
  0x1d   :  { %v62_v1 = vmul.f32 0.003921569, %v100_v61  ;;  %v108_v2 = vsel %vm224_vm1, %v107_v57, %v46_v23  ;;  %v116_v3 = vsel %vm228_vm2, %v115_v58, %v47_v24  ;;  %v129_v4 = vand.u32 2147483647, %v128_v59 }
  0x1e   :  { %v63_v5 = vmul.f32 0.003921569, %v108_v2  ;;  %v64_v6 = vmul.f32 0.003921569, %v116_v3  ;;  %v123_v7 = vor.u32 %v122_v51, %v121_v62  ;;  %v138_v8 = vand.u32 2147483648, %v218_v27 }
  0x1f   :  { %70 = vst [vmem:[#allocation5] sm:$0xff] %v62_v1  ;;  %v131_v9 = vor.u32 %v130_v60, %v129_v4  ;;  %v136_v10 = vcvt.s32.f32 %v135_v0  ;;  %v51_v11 = vmul.f32 255.0, %v43_v28  ;;  %v52_v12 = vmul.f32 255.0, %v44_v32 }
  0x20   :  { %71 = vst [vmem:[#allocation5 + $0x8] sm:$0xff] %v63_v5  ;;  %72 = vst [vmem:[#allocation5 + $0x10] sm:$0xff] %v64_v6  ;;  %v124_v13 = vsel %vm232_vm3, %v123_v7, %v48_v25  ;;  %vm134_vm5 = vcmp.lt.f32.partialorder %v133_v63, 8388608.0 }
  0x21   :  { %v65_v14 = vmul.f32 0.003921569, %v124_v13  ;;  %v132_v15 = vsel %vm236_vm4, %v131_v9, %v49_v26  ;;  %v137_v16 = vand.u32 2147483647, %v136_v10  ;;  %v143_v18 = vcvt.f32.s32 %v51_v11 }
  0x22   :  { %v66_v17 = vmul.f32 0.003921569, %v132_v15  ;;  %v141_v20 = vand.u32 2147483647, %v51_v11  ;;  %v151_v21 = vcvt.f32.s32 %v52_v12  ;;  %v146_v23 = vand.u32 2147483648, %v51_v11 }
  0x23   :  { %73 = vst [vmem:[#allocation5 + $0x18] sm:$0xff] %v65_v14  ;;  %v139_v19 = vor.u32 %v138_v8, %v137_v16  ;;  %v144_v22 = vcvt.s32.f32 %v143_v18  ;;  %v149_v24 = vand.u32 2147483647, %v52_v12  ;;  %v154_v25 = vand.u32 2147483648, %v52_v12 }
  0x24   :  { %74 = vst [vmem:[#allocation5 + $0x20] sm:$0xff] %v66_v17  ;;  %v152_v29 = vcvt.s32.f32 %v151_v21  ;;  %vm142_vm6 = vcmp.lt.f32.partialorder %v141_v20, 8388608.0 }
  0x25   :  { %v140_v28 = vsel %vm134_vm5, %v139_v19, %v218_v27  ;;  %v145_v31 = vand.u32 2147483647, %v144_v22  ;;  %vm150_vm7 = vcmp.lt.f32.partialorder %v149_v24, 8388608.0 }
  0x26   :  { %v67_v30 = vmul.f32 0.003921569, %v140_v28  ;;  %v153_v26 = vand.u32 2147483647, %v152_v29 }
  0x27   :  { %v147_v32 = vor.u32 %v146_v23, %v145_v31 }
  0x28   :  { %75 = vst [vmem:[#allocation5 + $0x28] sm:$0xff] %v67_v30  ;;  %v155_v33 = vor.u32 %v154_v25, %v153_v26 }
  0x29   :  { %v148_v34 = vsel %vm142_vm6, %v147_v32, %v51_v11 }
  0x2a   :  { %v68_v35 = vmul.f32 0.003921569, %v148_v34  ;;  %v156_v36 = vsel %vm150_vm7, %v155_v33, %v52_v12 }
  0x2b   :  { %v69_v37 = vmul.f32 0.003921569, %v156_v36 }
  0x2c   :  { %76 = vst [vmem:[#allocation5 + $0x30] sm:$0xff] %v68_v35 }
  0x2d   :  { %77 = vst [vmem:[#allocation5 + $0x38] sm:$0xff] %v69_v37 }
  0x2e   :  { %190 = shalt.err (!%p187_p9)
}
  0x2f   :  { %87 = dma.vmem_to_hbm [thread:$0]  %s85_s11, 1024, %s258_s1, [#allocation4]  }
  0x30   :  { %201 = dma.done.wait [#allocation4], 1024  }
  0x31   :  { %202 = vsyncadd [#allocation4], 4294966272 }
  0x32   :  { %91 = vsyncpa [#allocation3], 1 }
  0x33   :  { %92 = vsyncpa [#allocation4], 1 }

</bundles_post_ra>
